<compile_context>
chip_gen: v5e
topology: v5e:2x2
jax: 0.10.0
libtpu: 0.0.40
codegen_flags: <defaults>
</compile_context>

<pallas_src>
import functools

import jax
import jax.numpy as jnp
from jax import lax
from jax.experimental import pallas as pl
from jax.experimental.pallas import tpu as pltpu

EPS = 1e-5

_LANE = 128
_NCORES = 2                         # stats-pass core split (v7x megacore; harmless on 1-core chips)
_TILE_BUDGET_BYTES = 3 << 20        # ~3 MiB x-blocks: per-step 0.35 us overhead < ~15% of DMA time
_TILED_VMEM_LIMIT = 40 << 20        # fits Buffered(3) x + double-buffered out + temps, < v7x 64 MiB
_FUSED_ACT_SMALL_VMEM = 4 << 20     # v7x: keep fused (1-core, un-pipelined) path small
_FUSED_ACT_BIG_VMEM = 16 << 20      # v5e/v6e (128 MiB VMEM): ~5x worst-case temps still fit
_HAS_BUFFERED = hasattr(pl, "Buffered")


def _sublane_pad(n):
    return (n + 7) // 8 * 8


def _vmem_capacity_bytes():
    """Per-core VMEM capacity; conservative fallback if the query is unavailable."""
    try:
        cap = int(pltpu.get_tpu_info().vmem_capacity_bytes)
        if cap > 0:
            return cap
    except Exception:
        pass
    return 64 << 20   # v7x per-core value (most conservative)


def _x_block_spec(block_shape, index_map, n_steps):
    """BlockSpec for the streamed x input; deeper buffering when the loop is long."""
    if _HAS_BUFFERED and n_steps >= 4:
        try:
            return pl.BlockSpec(block_shape, index_map, pipeline_mode=pl.Buffered(3))
        except TypeError:
            pass
    return pl.BlockSpec(block_shape, index_map)


# ---------------------------------------------------------------------------
# Kernels
# ---------------------------------------------------------------------------
def _fused_kernel(x_ref, chan_ref, bnw_ref, bnb_ref, gamma_ref, beta_ref, o_ref,
                  *, n_count, n_chan):
    """Single-block BN + conditional modulation; x laid out as (B*C, S)."""
    x = x_ref[...].astype(jnp.float32)                        # (BC, S)
    row_sum = jnp.sum(x, axis=1, keepdims=True)               # (BC, 1)
    row_sq = jnp.sum(x * x, axis=1, keepdims=True)            # (BC, 1)

    # Combine the B rows of each channel (row r = b*C + c belongs to channel r % C).
    # Tiny static mask/reduce loop over C -> exact f32, VPU/XLU only (no MXU, no reshape).
    chan = chan_ref[...]                                       # (BC, 1) int32
    ch_sum = jnp.zeros_like(row_sum)
    ch_sq = jnp.zeros_like(row_sq)
    for c in range(n_chan):
        m = chan == c
        ch_sum = jnp.where(m, jnp.sum(jnp.where(m, row_sum, 0.0), keepdims=True), ch_sum)
        ch_sq = jnp.where(m, jnp.sum(jnp.where(m, row_sq, 0.0), keepdims=True), ch_sq)

    inv_n = 1.0 / n_count
    mean = ch_sum * inv_n                                      # per-row channel mean
    var = jnp.maximum(ch_sq * inv_n - mean * mean, 0.0)        # E[x^2] - mean^2 (no big temp)
    inv_std = lax.rsqrt(var + EPS)

    # Fold BN affine + conditional affine into one scale/shift per (b, c) row.
    a = gamma_ref[...] * bnw_ref[...] * inv_std                # (BC, 1)
    shift = beta_ref[...] + gamma_ref[...] * bnb_ref[...] - a * mean
    o_ref[...] = (a * x + shift).astype(o_ref.dtype)


def _stats_kernel(x_ref, sum_ref, sq_ref, *, s_tile, s_total, tiles_per_core, need_mask):
    """Per-(b,c) row sum / sum-of-squares, accumulated per core across lane tiles."""
    @pl.when(pl.program_id(1) == 0)
    def _():
        sum_ref[...] = jnp.zeros_like(sum_ref)
        sq_ref[...] = jnp.zeros_like(sq_ref)

    x = x_ref[...].astype(jnp.float32)                         # (BC, s_tile)
    if need_mask:
        # Mask lanes beyond the true spatial extent: covers both the ragged last block
        # (Pallas leaves the padded region of a partial block undefined) and fully
        # out-of-range tiles of the other core whose DMA index was clamped.
        tile = pl.program_id(0) * tiles_per_core + pl.program_id(1)
        lane = tile * s_tile + lax.broadcasted_iota(jnp.int32, x.shape, 1)
        x = jnp.where(lane < s_total, x, 0.0)

    sum_ref[...] += jnp.sum(x, axis=1, keepdims=True)
    sq_ref[...] += jnp.sum(x * x, axis=1, keepdims=True)


def _apply_kernel(x_ref, scale_ref, shift_ref, o_ref):
    """out = scale * x + shift (2 VPU ops / element); garbage tail lanes never written."""
    x = x_ref[...].astype(jnp.float32)                         # (BC, s_tile)
    o_ref[...] = (x * scale_ref[...] + shift_ref[...]).astype(o_ref.dtype)


# ---------------------------------------------------------------------------
# pallas_call wrappers
# ---------------------------------------------------------------------------
def _fused_call(x2, batch, n_chan, gamma, beta, bn_w, bn_b, vmem_cap):
    BC, S = x2.shape
    itemsize = x2.dtype.itemsize

    chan_row = jnp.tile(jnp.arange(n_chan, dtype=jnp.int32), batch).reshape(BC, 1)
    bnw_row = jnp.tile(bn_w.astype(jnp.float32), batch).reshape(BC, 1)
    bnb_row = jnp.tile(bn_b.astype(jnp.float32), batch).reshape(BC, 1)
    gamma_row = gamma.astype(jnp.float32).reshape(BC, 1)
    beta_row = beta.astype(jnp.float32).reshape(BC, 1)

    # Derive the scoped-VMEM request from the actual footprint (in + out + Mosaic
    # elementwise temporaries ~ a few x the padded activation), with headroom.
    act_bytes = _sublane_pad(BC) * (pl.cdiv(S, _LANE) * _LANE) * itemsize
    vmem_limit = int(min(vmem_cap - (24 << 20),
                         max(32 << 20, 5 * act_bytes + (16 << 20))))

    cost = pl.CostEstimate(flops=10 * BC * S, transcendentals=0,
                           bytes_accessed=2 * BC * S * itemsize)
    vspec = pl.BlockSpec(memory_space=pltpu.MemorySpace.VMEM)
    kernel = functools.partial(_fused_kernel, n_count=batch * S, n_chan=n_chan)
    return pl.pallas_call(
        kernel,
        out_shape=jax.ShapeDtypeStruct((BC, S), x2.dtype),
        in_specs=[vspec] * 6,
        out_specs=vspec,
        compiler_params=pltpu.CompilerParams(vmem_limit_bytes=vmem_limit),
        cost_estimate=cost,
    )(x2, chan_row, bnw_row, bnb_row, gamma_row, beta_row)


def _tiled_call(x2, batch, n_chan, gamma, beta, bn_w, bn_b):
    BC, S = x2.shape
    dtype = x2.dtype
    itemsize = dtype.itemsize
    bc_pad = _sublane_pad(BC)
    s_lane_pad = pl.cdiv(S, _LANE) * _LANE

    # Tile the spatial (lane) axis by a byte budget; no requirement that it divide S.
    lanes = max(_LANE, (_TILE_BUDGET_BYTES // (bc_pad * itemsize)) // _LANE * _LANE)
    s_tile = int(min(lanes, s_lane_pad))
    n_tiles = pl.cdiv(S, s_tile)
    tpc = pl.cdiv(n_tiles, _NCORES)                    # tiles per core
    need_mask = (S % s_tile != 0) or (_NCORES * tpc != n_tiles)

    # ---- pass 1: per-(b,c) sum / sumsq, one partial column per TensorCore ----
    def x_stats_map(c, i):
        t = c * tpc + i
        if need_mask:
            t = jnp.minimum(t, n_tiles - 1)            # clamp DMA; kernel masks it to zero
        return (0, t)

    stats_kernel = functools.partial(_stats_kernel, s_tile=s_tile, s_total=S,
                                     tiles_per_core=tpc, need_mask=need_mask)
    stats_cost = pl.CostEstimate(flops=4 * BC * S, transcendentals=0,
                                 bytes_accessed=BC * S * itemsize)
    row_sum, row_sq = pl.pallas_call(
        stats_kernel,
        out_shape=(jax.ShapeDtypeStruct((_NCORES, BC, 1), jnp.float32),
                   jax.ShapeDtypeStruct((_NCORES, BC, 1), jnp.float32)),
        grid=(_NCORES, tpc),
        in_specs=[_x_block_spec((BC, s_tile), x_stats_map, tpc)],
        out_specs=(pl.BlockSpec((None, BC, 1), lambda c, i: (c, 0, 0)),
                   pl.BlockSpec((None, BC, 1), lambda c, i: (c, 0, 0))),
        compiler_params=pltpu.CompilerParams(
            dimension_semantics=("parallel", "arbitrary"),
            vmem_limit_bytes=_TILED_VMEM_LIMIT),
        cost_estimate=stats_cost,
    )(x2)

    # ---- finalize (tiny, plain JAX): cross-core + cross-batch combine, fold affine ----
    n = batch * S
    ch_sum = row_sum.sum(axis=0).reshape(batch, n_chan).sum(axis=0)   # (C,)
    ch_sq = row_sq.sum(axis=0).reshape(batch, n_chan).sum(axis=0)
    mean = ch_sum / n
    var = jnp.maximum(ch_sq / n - mean * mean, 0.0)
    inv_std = lax.rsqrt(var + EPS)
    a_c = bn_w * inv_std                                              # (C,)
    scale_row = (gamma * a_c[None, :]).reshape(BC, 1).astype(jnp.float32)
    shift_row = (beta + gamma * (bn_b - a_c * mean)[None, :]).reshape(BC, 1).astype(jnp.float32)

    # ---- pass 2: out = scale * x + shift, lane-tiled, fully parallel ----
    apply_cost = pl.CostEstimate(flops=2 * BC * S, transcendentals=0,
                                 bytes_accessed=2 * BC * S * itemsize)
    out = pl.pallas_call(
        _apply_kernel,
        out_shape=jax.ShapeDtypeStruct((BC, S), dtype),
        grid=(n_tiles,),
        in_specs=[_x_block_spec((BC, s_tile), lambda i: (0, i), n_tiles),
                  pl.BlockSpec((BC, 1), lambda i: (0, 0)),
                  pl.BlockSpec((BC, 1), lambda i: (0, 0))],
        out_specs=pl.BlockSpec((BC, s_tile), lambda i: (0, i)),
        compiler_params=pltpu.CompilerParams(
            dimension_semantics=("parallel",),
            vmem_limit_bytes=_TILED_VMEM_LIMIT),
        cost_estimate=apply_cost,
    )(x2, scale_row, shift_row)
    return out


# ---------------------------------------------------------------------------
# Python wrapper (full module forward)
# ---------------------------------------------------------------------------
def conditional_batchnorm3d(x, class_id, params, *, force_tiled=False):
    """x: (B, C, D, H, W) NCDHW; class_id: (B,) int32."""
    B, C, D, H, W = x.shape
    S = D * H * W
    BC = B * C
    F = params["embed"].shape[1] // 2

    # Tiny conditioning MLPs: plain JAX (XLA fuses; pointless as a Pallas kernel).
    emb = jnp.take(params["embed"], class_id, axis=0)                 # (B, 2F)
    gi, bi = emb[:, :F], emb[:, F:]
    gamma = jnp.tanh(gi @ params["w1g"] + params["b1g"]) @ params["w2g"] + params["b2g"]
    beta = jnp.tanh(bi @ params["w1b"] + params["b1b"]) @ params["w2b"] + params["b2b"]

    # (B*C, S) layout: the small axis pads 6->8 sublanes instead of C=3->8.
    x2 = x.reshape(BC, S)

    act_bytes = _sublane_pad(BC) * (pl.cdiv(S, _LANE) * _LANE) * x.dtype.itemsize
    cap = _vmem_capacity_bytes()
    fused_thresh = _FUSED_ACT_BIG_VMEM if cap >= (96 << 20) else _FUSED_ACT_SMALL_VMEM

    if (not force_tiled) and act_bytes <= fused_thresh:
        out2 = _fused_call(x2, B, C, gamma, beta, params["bn_w"], params["bn_b"], cap)
    else:
        out2 = _tiled_call(x2, B, C, gamma, beta, params["bn_w"], params["bn_b"])
    return out2.reshape(B, C, D, H, W)


# ---------------------------------------------------------------------------
# Deterministic parameter init (matches the module's __init__ shapes).
# Linear weights are stored already transposed: (in_features, out_features).
# ---------------------------------------------------------------------------
def init_params(key, num_features, num_classes, num_output_channels):
    F, F2, C = num_features, num_features // 2, num_output_channels
    ks = jax.random.split(key, 8)

    def linear(kw, kb, fan_in, fan_out):
        bound = 1.0 / jnp.sqrt(fan_in)
        w = jax.random.uniform(kw, (fan_in, fan_out), jnp.float32, -bound, bound)
        b = jax.random.uniform(kb, (1, fan_out), jnp.float32, -bound, bound)
        return w, b

    w1g, b1g = linear(ks[0], ks[1], F, F2)
    w1b, b1b = linear(ks[2], ks[3], F, F2)
    w2g, b2g = linear(ks[4], ks[5], F2, C)
    w2b, b2b = linear(ks[6], ks[7], F2, C)

    embed = jnp.concatenate(
        [jnp.ones((num_classes, F), jnp.float32),
         jnp.zeros((num_classes, F), jnp.float32)], axis=1)

    return dict(embed=embed,
                w1g=w1g, b1g=b1g, w2g=w2g, b2g=b2g,
                w1b=w1b, b1b=b1b, w2b=w2b, b2b=b2b,
                bn_w=jnp.ones((C,), jnp.float32),
                bn_b=jnp.zeros((C,), jnp.float32))


# ---------------------------------------------------------------------------
# Pure-JAX reference (sanity check of the kernels).
# ---------------------------------------------------------------------------
def reference(x, class_id, p):
    B, C = x.shape[:2]
    F = p["embed"].shape[1] // 2
    xf = x.astype(jnp.float32)
    mean = jnp.mean(xf, axis=(0, 2, 3, 4), keepdims=True)
    var = jnp.mean((xf - mean) ** 2, axis=(0, 2, 3, 4), keepdims=True)
    y = (xf - mean) / jnp.sqrt(var + EPS)
    y = y * p["bn_w"].reshape(1, C, 1, 1, 1) + p["bn_b"].reshape(1, C, 1, 1, 1)
    emb = jnp.take(p["embed"], class_id, axis=0)
    gi, bi = emb[:, :F], emb[:, F:]
    g = jnp.tanh(gi @ p["w1g"] + p["b1g"]) @ p["w2g"] + p["b2g"]
    b = jnp.tanh(bi @ p["w1b"] + p["b1b"]) @ p["w2b"] + p["b2b"]
    return g.reshape(B, C, 1, 1, 1) * y + b.reshape(B, C, 1, 1, 1)


if __name__ == "__main__":
    NUM_FEATURES, NUM_CLASSES, C = 32, 10, 3

    key = jax.random.PRNGKey(0)
    k_p, k_cls, k_x0, k_x1, k_x2 = jax.random.split(key, 5)

    params = init_params(k_p, NUM_FEATURES, NUM_CLASSES, C)
    class_id = jax.random.randint(k_cls, (2,), 0, NUM_CLASSES, jnp.int32)

    def check(name, shape, *, force_tiled, k):
        x = jax.random.normal(k, shape, jnp.float32)
        ref = reference(x, class_id, params)
        out = conditional_batchnorm3d(x, class_id, params, force_tiled=force_tiled)
        out, ref = jax.block_until_ready((out, ref))
        assert out.shape == ref.shape, f"{name}: shape {out.shape} vs {ref.shape}"
        err = float(jnp.max(jnp.abs(out - ref)))
        assert jnp.allclose(out, ref, atol=2e-4, rtol=2e-4), f"{name}: max err {err}"

    # 1) small activation -> fused single-block kernel ((B*C, S) layout, one HBM pass each way).
    check("fused", (2, 3, 8, 16, 16), force_tiled=False, k=k_x0)
    # 2) same input forced through the tiled path: single tile per core, core 1's tile is
    #    clamped + fully masked (exercises the no-pad / clamp logic and the 2-column combine).
    check("tiled-small", (2, 3, 8, 16, 16), force_tiled=True, k=k_x0)
    # 3) multi-tile tiled path: S = 4 * s_tile -> 2 tiles per core, Buffered(3) active,
    #    no masking (exercises the stats accumulator across grid steps on both columns).
    check("tiled-multi", (2, 3, 48, 64, 128), force_tiled=True, k=k_x1)
    # 4) ragged spatial size (S = 300, not a multiple of 128): in-kernel lane masking for
    #    stats and a clipped partial output write for apply (no jnp.pad / slice round trips).
    check("tiled-ragged", (2, 3, 3, 10, 10), force_tiled=True, k=k_x2)

    print("KERNEL_OK")
</pallas_src>

<mosaic_0001>
module attributes {stable_mosaic.version = 11 : i64} {
  func.func @_fused_kernel(%arg0: memref<6x2048xf32, #tpu.memory_space<vmem>>, %arg1: memref<6x1xi32, #tpu.memory_space<vmem>>, %arg2: memref<6x1xf32, #tpu.memory_space<vmem>>, %arg3: memref<6x1xf32, #tpu.memory_space<vmem>>, %arg4: memref<6x1xf32, #tpu.memory_space<vmem>>, %arg5: memref<6x1xf32, #tpu.memory_space<vmem>>, %arg6: memref<6x2048xf32, #tpu.memory_space<vmem>>) attributes {dimension_semantics = [], scalar_prefetch = 0 : i64, scratch_operands = 0 : i64, tpu.core_type = #tpu.core_type<tc>} {
    %c0 = arith.constant 0 : index
    %c0_0 = arith.constant 0 : index
    %0 = vector.load %arg0[%c0, %c0_0] : memref<6x2048xf32, #tpu.memory_space<vmem>>, vector<6x2048xf32>
    %cst = arith.constant dense<0.000000e+00> : vector<6xf32>
    %1 = vector.multi_reduction <add>, %0, %cst [1] : vector<6x2048xf32> to vector<6xf32>
    %2 = vector.shape_cast %1 : vector<6xf32> to vector<6x1xf32>
    %3 = arith.mulf %0, %0 : vector<6x2048xf32>
    %cst_1 = arith.constant dense<0.000000e+00> : vector<6xf32>
    %4 = vector.multi_reduction <add>, %3, %cst_1 [1] : vector<6x2048xf32> to vector<6xf32>
    %5 = vector.shape_cast %4 : vector<6xf32> to vector<6x1xf32>
    %c0_2 = arith.constant 0 : index
    %c0_3 = arith.constant 0 : index
    %6 = vector.load %arg1[%c0_2, %c0_3] : memref<6x1xi32, #tpu.memory_space<vmem>>, vector<6x1xi32>
    %cst_4 = arith.constant 0.000000e+00 : f32
    %7 = vector.broadcast %cst_4 : f32 to vector<6x1xf32>
    %cst_5 = arith.constant 0.000000e+00 : f32
    %8 = vector.broadcast %cst_5 : f32 to vector<6x1xf32>
    %c0_i32 = arith.constant 0 : i32
    %9 = vector.broadcast %c0_i32 : i32 to vector<6x1xi32>
    %10 = arith.cmpi eq, %6, %9 : vector<6x1xi32>
    %cst_6 = arith.constant 0.000000e+00 : f32
    %11 = vector.broadcast %cst_6 : f32 to vector<6x1xf32>
    %12 = arith.select %10, %2, %11 : vector<6x1xi1>, vector<6x1xf32>
    %13 = vector.shape_cast %12 : vector<6x1xf32> to vector<1x6x1xf32>
    %cst_7 = arith.constant dense<0.000000e+00> : vector<1xf32>
    %14 = vector.multi_reduction <add>, %13, %cst_7 [1, 2] : vector<1x6x1xf32> to vector<1xf32>
    %15 = vector.shape_cast %14 : vector<1xf32> to vector<1x1x1xf32>
    %16 = vector.extract %15[0, 0, 0] : f32 from vector<1x1x1xf32>
    %17 = vector.broadcast %16 : f32 to vector<1x1xf32>
    %18 = vector.shape_cast %17 : vector<1x1xf32> to vector<1x1xf32>
    %19 = vector.broadcast %18 : vector<1x1xf32> to vector<6x1xf32>
    %20 = arith.select %10, %19, %7 : vector<6x1xi1>, vector<6x1xf32>
    %cst_8 = arith.constant 0.000000e+00 : f32
    %21 = vector.broadcast %cst_8 : f32 to vector<6x1xf32>
    %22 = arith.select %10, %5, %21 : vector<6x1xi1>, vector<6x1xf32>
    %23 = vector.shape_cast %22 : vector<6x1xf32> to vector<1x6x1xf32>
    %cst_9 = arith.constant dense<0.000000e+00> : vector<1xf32>
    %24 = vector.multi_reduction <add>, %23, %cst_9 [1, 2] : vector<1x6x1xf32> to vector<1xf32>
    %25 = vector.shape_cast %24 : vector<1xf32> to vector<1x1x1xf32>
    %26 = vector.extract %25[0, 0, 0] : f32 from vector<1x1x1xf32>
    %27 = vector.broadcast %26 : f32 to vector<1x1xf32>
    %28 = vector.shape_cast %27 : vector<1x1xf32> to vector<1x1xf32>
    %29 = vector.broadcast %28 : vector<1x1xf32> to vector<6x1xf32>
    %30 = arith.select %10, %29, %8 : vector<6x1xi1>, vector<6x1xf32>
    %c1_i32 = arith.constant 1 : i32
    %31 = vector.broadcast %c1_i32 : i32 to vector<6x1xi32>
    %32 = arith.cmpi eq, %6, %31 : vector<6x1xi32>
    %cst_10 = arith.constant 0.000000e+00 : f32
    %33 = vector.broadcast %cst_10 : f32 to vector<6x1xf32>
    %34 = arith.select %32, %2, %33 : vector<6x1xi1>, vector<6x1xf32>
    %35 = vector.shape_cast %34 : vector<6x1xf32> to vector<1x6x1xf32>
    %cst_11 = arith.constant dense<0.000000e+00> : vector<1xf32>
    %36 = vector.multi_reduction <add>, %35, %cst_11 [1, 2] : vector<1x6x1xf32> to vector<1xf32>
    %37 = vector.shape_cast %36 : vector<1xf32> to vector<1x1x1xf32>
    %38 = vector.extract %37[0, 0, 0] : f32 from vector<1x1x1xf32>
    %39 = vector.broadcast %38 : f32 to vector<1x1xf32>
    %40 = vector.shape_cast %39 : vector<1x1xf32> to vector<1x1xf32>
    %41 = vector.broadcast %40 : vector<1x1xf32> to vector<6x1xf32>
    %42 = arith.select %32, %41, %20 : vector<6x1xi1>, vector<6x1xf32>
    %cst_12 = arith.constant 0.000000e+00 : f32
    %43 = vector.broadcast %cst_12 : f32 to vector<6x1xf32>
    %44 = arith.select %32, %5, %43 : vector<6x1xi1>, vector<6x1xf32>
    %45 = vector.shape_cast %44 : vector<6x1xf32> to vector<1x6x1xf32>
    %cst_13 = arith.constant dense<0.000000e+00> : vector<1xf32>
    %46 = vector.multi_reduction <add>, %45, %cst_13 [1, 2] : vector<1x6x1xf32> to vector<1xf32>
    %47 = vector.shape_cast %46 : vector<1xf32> to vector<1x1x1xf32>
    %48 = vector.extract %47[0, 0, 0] : f32 from vector<1x1x1xf32>
    %49 = vector.broadcast %48 : f32 to vector<1x1xf32>
    %50 = vector.shape_cast %49 : vector<1x1xf32> to vector<1x1xf32>
    %51 = vector.broadcast %50 : vector<1x1xf32> to vector<6x1xf32>
    %52 = arith.select %32, %51, %30 : vector<6x1xi1>, vector<6x1xf32>
    %c2_i32 = arith.constant 2 : i32
    %53 = vector.broadcast %c2_i32 : i32 to vector<6x1xi32>
    %54 = arith.cmpi eq, %6, %53 : vector<6x1xi32>
    %cst_14 = arith.constant 0.000000e+00 : f32
    %55 = vector.broadcast %cst_14 : f32 to vector<6x1xf32>
    %56 = arith.select %54, %2, %55 : vector<6x1xi1>, vector<6x1xf32>
    %57 = vector.shape_cast %56 : vector<6x1xf32> to vector<1x6x1xf32>
    %cst_15 = arith.constant dense<0.000000e+00> : vector<1xf32>
    %58 = vector.multi_reduction <add>, %57, %cst_15 [1, 2] : vector<1x6x1xf32> to vector<1xf32>
    %59 = vector.shape_cast %58 : vector<1xf32> to vector<1x1x1xf32>
    %60 = vector.extract %59[0, 0, 0] : f32 from vector<1x1x1xf32>
    %61 = vector.broadcast %60 : f32 to vector<1x1xf32>
    %62 = vector.shape_cast %61 : vector<1x1xf32> to vector<1x1xf32>
    %63 = vector.broadcast %62 : vector<1x1xf32> to vector<6x1xf32>
    %64 = arith.select %54, %63, %42 : vector<6x1xi1>, vector<6x1xf32>
    %cst_16 = arith.constant 0.000000e+00 : f32
    %65 = vector.broadcast %cst_16 : f32 to vector<6x1xf32>
    %66 = arith.select %54, %5, %65 : vector<6x1xi1>, vector<6x1xf32>
    %67 = vector.shape_cast %66 : vector<6x1xf32> to vector<1x6x1xf32>
    %cst_17 = arith.constant dense<0.000000e+00> : vector<1xf32>
    %68 = vector.multi_reduction <add>, %67, %cst_17 [1, 2] : vector<1x6x1xf32> to vector<1xf32>
    %69 = vector.shape_cast %68 : vector<1xf32> to vector<1x1x1xf32>
    %70 = vector.extract %69[0, 0, 0] : f32 from vector<1x1x1xf32>
    %71 = vector.broadcast %70 : f32 to vector<1x1xf32>
    %72 = vector.shape_cast %71 : vector<1x1xf32> to vector<1x1xf32>
    %73 = vector.broadcast %72 : vector<1x1xf32> to vector<6x1xf32>
    %74 = arith.select %54, %73, %52 : vector<6x1xi1>, vector<6x1xf32>
    %cst_18 = arith.constant 2.44140625E-4 : f32
    %75 = vector.broadcast %cst_18 : f32 to vector<6x1xf32>
    %76 = arith.mulf %64, %75 : vector<6x1xf32>
    %cst_19 = arith.constant 2.44140625E-4 : f32
    %77 = vector.broadcast %cst_19 : f32 to vector<6x1xf32>
    %78 = arith.mulf %74, %77 : vector<6x1xf32>
    %79 = arith.mulf %76, %76 : vector<6x1xf32>
    %80 = arith.subf %78, %79 : vector<6x1xf32>
    %cst_20 = arith.constant 0.000000e+00 : f32
    %81 = vector.broadcast %cst_20 : f32 to vector<6x1xf32>
    %82 = arith.maximumf %80, %81 : vector<6x1xf32>
    %cst_21 = arith.constant 9.99999974E-6 : f32
    %83 = vector.broadcast %cst_21 : f32 to vector<6x1xf32>
    %84 = arith.addf %82, %83 : vector<6x1xf32>
    %85 = math.rsqrt %84 : vector<6x1xf32>
    %c0_22 = arith.constant 0 : index
    %c0_23 = arith.constant 0 : index
    %86 = vector.load %arg4[%c0_22, %c0_23] : memref<6x1xf32, #tpu.memory_space<vmem>>, vector<6x1xf32>
    %c0_24 = arith.constant 0 : index
    %c0_25 = arith.constant 0 : index
    %87 = vector.load %arg2[%c0_24, %c0_25] : memref<6x1xf32, #tpu.memory_space<vmem>>, vector<6x1xf32>
    %88 = arith.mulf %86, %87 : vector<6x1xf32>
    %89 = arith.mulf %88, %85 : vector<6x1xf32>
    %c0_26 = arith.constant 0 : index
    %c0_27 = arith.constant 0 : index
    %90 = vector.load %arg5[%c0_26, %c0_27] : memref<6x1xf32, #tpu.memory_space<vmem>>, vector<6x1xf32>
    %c0_28 = arith.constant 0 : index
    %c0_29 = arith.constant 0 : index
    %91 = vector.load %arg4[%c0_28, %c0_29] : memref<6x1xf32, #tpu.memory_space<vmem>>, vector<6x1xf32>
    %c0_30 = arith.constant 0 : index
    %c0_31 = arith.constant 0 : index
    %92 = vector.load %arg3[%c0_30, %c0_31] : memref<6x1xf32, #tpu.memory_space<vmem>>, vector<6x1xf32>
    %93 = arith.mulf %91, %92 : vector<6x1xf32>
    %94 = arith.addf %90, %93 : vector<6x1xf32>
    %95 = arith.mulf %89, %76 : vector<6x1xf32>
    %96 = arith.subf %94, %95 : vector<6x1xf32>
    %97 = vector.broadcast %89 : vector<6x1xf32> to vector<6x2048xf32>
    %98 = arith.mulf %97, %0 : vector<6x2048xf32>
    %99 = vector.broadcast %96 : vector<6x1xf32> to vector<6x2048xf32>
    %100 = arith.addf %98, %99 : vector<6x2048xf32>
    %c0_32 = arith.constant 0 : index
    %c0_33 = arith.constant 0 : index
    %101 = vector.load %arg6[%c0_32, %c0_33] : memref<6x2048xf32, #tpu.memory_space<vmem>>, vector<6x2048xf32>
    tpu.vector_store %arg6[%c0_32, %c0_33], %100 {strides = array<i32>} : memref<6x2048xf32, #tpu.memory_space<vmem>>, vector<6x2048xf32>,
    return
  }
}

</mosaic_0001>

<bundles_post_ra>
// kernel: tpu_custom_call.1
= control target key start
LH: loop header
LB: loop body
LE: loop exit
PB: predicated region body
PF: predicated region fallthrough
CT: control target
= control target key end

     0   :  { %11 = vsyncpa [#allocation3], 0  ;;  %s614_s0 = inlined_call_operand.hbm [shape: f32[6,2048], index: 0, kind: input, shape index: {}]   ;;  %s615_s1 = inlined_call_operand.vmem [shape: s32[6,1], index: 1, kind: input, shape index: {}]   ;;  %s616_s2 = inlined_call_operand.vmem [shape: f32[6,1], index: 2, kind: input, shape index: {}]   ;;  %s617_s3 = inlined_call_operand.vmem [shape: f32[6,1], index: 3, kind: input, shape index: {}]   ;;  %s618_s4 = inlined_call_operand.vmem [shape: f32[6,1], index: 4, kind: input, shape index: {}]   ;;  %s619_s5 = inlined_call_operand.vmem [shape: f32[6,1], index: 5, kind: input, shape index: {}]   ;;  %s620_s6 = inlined_call_operand.hbm [shape: f32[6,2048], index: 6, kind: output, shape index: {}]  }
   0x1   :  { %12 = vsyncpa [#allocation4], 0  ;;  %s18_s23 = sshll.u32 %s614_s0, 4  ;;  %s392_s24 = smov [#allocation2]   ;;  %s19_s23 = int_to_ptr.hbm [resolvable:$true] %s18_s23 }
   0x2   :  { %s20_s25 = sshll.u32 %s392_s24, 4  ;;  %s21_s25 = int_to_ptr.vmem [resolvable:$true] %s20_s25 }
   0x3   :  { %23 = dma.hbm_to_vmem [thread:$0]  %s19_s23, 2048, %s21_s25, [#allocation3]  }
   0x4   :  { %388 = dma.done.wait [#allocation3], 2048  }
   0x5   :  { %389 = vsyncadd [#allocation3], 4294965248  ;;  %vm54_vm0 = vcmask 1045504   ;;  %v433_v0 = vld [vmem:[#allocation2] sm:$0x3f]  ;;  %vm140_vm4 = vcmask 5120  }
   0x6   :  { %v435_v1 = vld [vmem:[#allocation2 + $0x8] sm:$0x3f]  ;;  %v437_v2 = vld [vmem:[#allocation2 + $0x10] sm:$0x3f]  ;;  %v439_v3 = vld [vmem:[#allocation2 + $0x18] sm:$0x3f]  ;;  %v88_v9 = vmul.f32 %v433_v0, %v433_v0 }
   0x7   :  { %v55_v4 = vsel %vm54_vm0, %v433_v0, 0.0  ;;  %v56_v5 = vsel %vm54_vm0, %v435_v1, 0.0  ;;  %v58_v6 = vsel %vm54_vm0, %v437_v2, 0.0  ;;  %v447_v7 = vld [vmem:[#allocation2 + $0x20] sm:$0x3f]  ;;  %v60_v10 = vsel %vm54_vm0, %v439_v3, 0.0 }
   0x8   :  { %v57_v8 = vadd.f32 %v56_v5, %v55_v4  ;;  %v89_v11 = vmul.f32 %v435_v1, %v435_v1  ;;  %v90_v12 = vmul.f32 %v437_v2, %v437_v2  ;;  %v457_v13 = vld [vmem:[#allocation2 + $0x28] sm:$0x3f]  ;;  %v62_v15 = vsel %vm54_vm0, %v447_v7, 0.0  ;;  %v463_v17 = vld [vmem:[#allocation2 + $0x30] sm:$0x3f]  ;;  %s311_s16 = sshll.u32 %s620_s6, 4  ;;  %s312_s16 = int_to_ptr.hbm [resolvable:$true] %s311_s16 }
   0x9   :  { %v91_v16 = vmul.f32 %v439_v3, %v439_v3  ;;  %v104_v19 = vsel %vm54_vm0, %v88_v9, 0.0  ;;  %v64_v20 = vsel %vm54_vm0, %v457_v13, 0.0  ;;  %v92_v21 = vmul.f32 %v447_v7, %v447_v7  ;;  %v472_v24 = vld [vmem:[#allocation2 + $0x38] sm:$0x3f]  ;;  %v479_v30 = vld [vmem:[#allocation2 + $0x40] sm:$0x3f] }
   0xa   :  { %v59_v14 = vadd.f32 %v58_v6, %v57_v8  ;;  %v105_v22 = vsel %vm54_vm0, %v89_v11, 0.0  ;;  %v107_v23 = vsel %vm54_vm0, %v90_v12, 0.0  ;;  %v66_v27 = vsel %vm54_vm0, %v463_v17, 0.0  ;;  %v486_v36 = vld [vmem:[#allocation2 + $0x48] sm:$0x3f] }
   0xb   :  { %v106_v26 = vadd.f32 %v105_v22, %v104_v19  ;;  %v93_v28 = vmul.f32 %v457_v13, %v457_v13  ;;  %v109_v29 = vsel %vm54_vm0, %v91_v16, 0.0  ;;  %v68_v33 = vsel %vm54_vm0, %v472_v24, 0.0  ;;  %v493_v42 = vld [vmem:[#allocation2 + $0x50] sm:$0x3f]  ;;  %v500_v48 = vld [vmem:[#allocation2 + $0x58] sm:$0x3f] }
   0xc   :  { %v61_v18 = vadd.f32 %v60_v10, %v59_v14  ;;  %v94_v34 = vmul.f32 %v463_v17, %v463_v17  ;;  %v111_v35 = vsel %vm54_vm0, %v92_v21, 0.0  ;;  %v70_v39 = vsel %vm54_vm0, %v479_v30, 0.0  ;;  %v507_v54 = vld [vmem:[#allocation2 + $0x60] sm:$0x3f]  ;;  %v514_v60 = vld [vmem:[#allocation2 + $0x68] sm:$0x3f] }
   0xd   :  { %v108_v32 = vadd.f32 %v107_v23, %v106_v26  ;;  %v95_v40 = vmul.f32 %v472_v24, %v472_v24  ;;  %v113_v41 = vsel %vm54_vm0, %v93_v28, 0.0  ;;  %v72_v45 = vsel %vm54_vm0, %v486_v36, 0.0  ;;  %v521_v6 = vld [vmem:[#allocation2 + $0x70] sm:$0x3f]  ;;  %v528_v14 = vld [vmem:[#allocation2 + $0x78] sm:$0x3f] }
   0xe   :  { %v63_v25 = vadd.f32 %v62_v15, %v61_v18  ;;  %v96_v46 = vmul.f32 %v479_v30, %v479_v30  ;;  %v115_v47 = vsel %vm54_vm0, %v94_v34, 0.0  ;;  %v74_v51 = vsel %vm54_vm0, %v493_v42, 0.0 }
   0xf   :  { %v110_v38 = vadd.f32 %v109_v29, %v108_v32  ;;  %v97_v52 = vmul.f32 %v486_v36, %v486_v36  ;;  %v117_v53 = vsel %vm54_vm0, %v95_v40, 0.0  ;;  %v76_v57 = vsel %vm54_vm0, %v500_v48, 0.0  ;;  %v548_v40 = vld [vmem:[%s615_s1] sm:$0x3f] }
  0x10   :  { %v65_v31 = vadd.f32 %v64_v20, %v63_v25  ;;  %v98_v58 = vmul.f32 %v493_v42, %v493_v42  ;;  %v119_v59 = vsel %vm54_vm0, %v96_v46, 0.0  ;;  %v78_v63 = vsel %vm54_vm0, %v507_v54, 0.0 }
  0x11   :  { %v112_v44 = vadd.f32 %v111_v35, %v110_v38  ;;  %v99_v4 = vmul.f32 %v500_v48, %v500_v48  ;;  %v121_v5 = vsel %vm54_vm0, %v97_v52, 0.0  ;;  %v80_v10 = vsel %vm54_vm0, %v514_v60, 0.0 }
  0x12   :  { %v67_v37 = vadd.f32 %v66_v27, %v65_v31  ;;  %v100_v11 = vmul.f32 %v507_v54, %v507_v54  ;;  %v123_v12 = vsel %vm54_vm0, %v98_v58, 0.0  ;;  %v82_v18 = vsel %vm54_vm0, %v521_v6, 0.0 }
  0x13   :  { %v114_v50 = vadd.f32 %v113_v41, %v112_v44  ;;  %v101_v19 = vmul.f32 %v514_v60, %v514_v60  ;;  %v125_v20 = vsel %vm54_vm0, %v99_v4, 0.0  ;;  %v84_v23 = vsel %vm54_vm0, %v528_v14, 0.0 }
  0x14   :  { %v69_v43 = vadd.f32 %v68_v33, %v67_v37  ;;  %v102_v25 = vmul.f32 %v521_v6, %v521_v6  ;;  %v127_v26 = vsel %vm54_vm0, %v100_v11, 0.0  ;;  %v103_v29 = vmul.f32 %v528_v14, %v528_v14 }
  0x15   :  { %v116_v56 = vadd.f32 %v115_v47, %v114_v50  ;;  %v129_v31 = vsel %vm54_vm0, %v101_v19, 0.0  ;;  %vm193_vm1 = vcmp.eq.s32.totalorder %v548_v40, 2  ;;  %vm166_vm2 = vcmp.eq.s32.totalorder %v548_v40, 1 }
  0x16   :  { %v71_v49 = vadd.f32 %v70_v39, %v69_v43  ;;  %v131_v34 = vsel %vm54_vm0, %v102_v25, 0.0  ;;  %v133_v37 = vsel %vm54_vm0, %v103_v29, 0.0  ;;  %vm138_vm3 = vcmp.eq.s32.totalorder %v548_v40, 0  ;;  %v241_v40 = vld [vmem:[%s617_s3] sm:$0x3f] }
  0x17   :  { %v118_v62 = vadd.f32 %v117_v53, %v116_v56 }
  0x18   :  { %v73_v55 = vadd.f32 %v72_v45, %v71_v49 }
  0x19   :  { %v120_v9 = vadd.f32 %v119_v59, %v118_v62 }
  0x1a   :  { %v75_v61 = vadd.f32 %v74_v51, %v73_v55 }
  0x1b   :  { %v122_v16 = vadd.f32 %v121_v5, %v120_v9 }
  0x1c   :  { %v77_v8 = vadd.f32 %v76_v57, %v75_v61 }
  0x1d   :  { %v124_v22 = vadd.f32 %v123_v12, %v122_v16 }
  0x1e   :  { %v79_v15 = vadd.f32 %v78_v63, %v77_v8 }
  0x1f   :  { %v126_v28 = vadd.f32 %v125_v20, %v124_v22 }
  0x20   :  { %v81_v21 = vadd.f32 %v80_v10, %v79_v15 }
  0x21   :  { %v128_v33 = vadd.f32 %v127_v26, %v126_v28 }
  0x22   :  { %v83_v27 = vadd.f32 %v82_v18, %v81_v21 }
  0x23   :  { %v130_v35 = vadd.f32 %v129_v31, %v128_v33 }
  0x24   :  { %v85_v32 = vadd.f32 %v84_v23, %v83_v27 }
  0x25   :  { %v132_v38 = vadd.f32 %v131_v34, %v130_v35 }
  0x26   :  { %86 = vadd.xlane.f32.xlu0 %v85_v32 }
  0x27   :  { %v134_v39 = vadd.f32 %v133_v37, %v132_v38 }
  0x2e   :  { %135 = vadd.xlane.f32.xlu0 %v134_v39 }
  0x99   :  { %v87_v41 = vpop.xlane.xlu0 %86 }
  0x9a   :  { %v194_v43 = vsel %vm193_vm1, %v87_v41, 0.0  ;;  %v167_v44 = vsel %vm166_vm2, %v87_v41, 0.0  ;;  %v139_v45 = vsel %vm138_vm3, %v87_v41, 0.0 }
  0x9b   :  { %v195_v46 = vsel %vm140_vm4, %v194_v43, 0.0  ;;  %v168_v47 = vsel %vm140_vm4, %v167_v44, 0.0  ;;  %v141_v49 = vsel %vm140_vm4, %v139_v45, 0.0 }
  0x9c   :  { %196 = vadd.xlane.f32.xlu0 %v195_v46  ;;  %169 = vadd.xlane.f32.xlu2 %v168_v47 }
  0x9d   :  { %142 = vadd.xlane.f32.xlu1 %v141_v49 }
  0xa1   :  { %v136_v50 = vpop.xlane.xlu0 %135 }
  0xa2   :  { %v180_v51 = vsel %vm166_vm2, %v136_v50, 0.0  ;;  %v153_v52 = vsel %vm138_vm3, %v136_v50, 0.0  ;;  %v207_v56 = vsel %vm193_vm1, %v136_v50, 0.0 }
  0xa3   :  { %v181_v53 = vsel %vm140_vm4, %v180_v51, 0.0  ;;  %v154_v55 = vsel %vm140_vm4, %v153_v52, 0.0  ;;  %v208_v57 = vsel %vm140_vm4, %v207_v56, 0.0  ;;  %v393_v52 = vmov 0  }
  0xa4   :  { %182 = vadd.xlane.f32.xlu2 %v181_v53  ;;  %337 = vset.pattern.permute.xlu0 %v393_v52 }
  0xa5   :  { %155 = vadd.xlane.f32.xlu1 %v154_v55  ;;  %336 = vset.pattern.permute.xlu2 %v393_v52 }
  0xad   :  { %209 = vadd.xlane.f32.xlu1 %v208_v57 }
 0x10f   :  { %v170_v58 = vpop.xlane.xlu2 %169  ;;  %v197_v59 = vpop.xlane.xlu0 %196 }
 0x110   :  { %v171_v61 = vrot.slane %v170_v58, 4  ;;  %v143_v62 = vpop.xlane.xlu1 %142  ;;  %v198_v4 = vrot.slane %v197_v59, 4 }
 0x111   :  { %v144_v63 = vrot.slane %v143_v62, 4 }
 0x112   :  { %v172_v8 = vadd.f32 %v171_v61, %v170_v58  ;;  %v199_v10 = vadd.f32 %v198_v4, %v197_v59 }
 0x113   :  { %v145_v5 = vadd.f32 %v144_v63, %v143_v62 }
 0x114   :  { %v173_v15 = vrot.slane %v172_v8, 2  ;;  %v200_v21 = vrot.slane %v199_v10, 2 }
 0x115   :  { %v146_v9 = vrot.slane %v145_v5, 2 }
 0x116   :  { %v174_v27 = vadd.f32 %v173_v15, %v172_v8  ;;  %v201_v31 = vadd.f32 %v200_v21, %v199_v10  ;;  %v236_v21 = vld [vmem:[%s618_s4] sm:$0x3f] }
 0x117   :  { %v183_v11 = vpop.xlane.xlu2 %182  ;;  %v147_v12 = vadd.f32 %v146_v9, %v145_v5 }
 0x118   :  { %v184_v16 = vrot.slane %v183_v11, 4  ;;  %v156_v18 = vpop.xlane.xlu1 %155  ;;  %v175_v34 = vrot.slane %v174_v27, 1  ;;  %v202_v39 = vrot.slane %v201_v31, 1 }
 0x119   :  { %v157_v19 = vrot.slane %v156_v18, 4  ;;  %v148_v20 = vrot.slane %v147_v12, 1 }
 0x11a   :  { %v185_v22 = vadd.f32 %v184_v16, %v183_v11  ;;  %v176_v45 = vadd.f32 %v175_v34, %v174_v27  ;;  %v203_v47 = vadd.f32 %v202_v39, %v201_v31  ;;  %v242_v27 = vmul.f32 %v241_v40, %v236_v21 }
 0x11b   :  { %v158_v23 = vadd.f32 %v157_v19, %v156_v18  ;;  %v149_v25 = vadd.f32 %v148_v20, %v147_v12 }
 0x11c   :  { %v186_v26 = vrot.slane %v185_v22, 2 }
 0x11d   :  { %v159_v28 = vrot.slane %v158_v23, 2  ;;  %321 = vpush %v149_v25 }
 0x11e   :  { %v187_v29 = vadd.f32 %v186_v26, %v185_v22 }
 0x11f   :  { %v160_v32 = vadd.f32 %v159_v28, %v158_v23  ;;  %v237_v23 = vld [vmem:[%s616_s2] sm:$0x3f]  ;;  %s394_s2 = smov [#allocation5]  }
 0x120   :  { %v210_v33 = vpop.xlane.xlu1 %209  ;;  %v188_v35 = vrot.slane %v187_v29, 1  ;;  %v238_v26 = vmul.f32 %v237_v23, %v236_v21  ;;  %s309_s3 = sshll.u32 %s394_s2, 4  ;;  %s310_s3 = int_to_ptr.vmem [resolvable:$true] %s309_s3 }
 0x121   :  { %v211_v37 = vrot.slane %v210_v33, 4  ;;  %v161_v38 = vrot.slane %v160_v32, 1 }
 0x122   :  { %v189_v44 = vadd.f32 %v188_v35, %v187_v29  ;;  %v240_v29 = vld [vmem:[%s619_s5] sm:$0x3f] }
 0x123   :  { %v212_v41 = vadd.f32 %v211_v37, %v210_v33  ;;  %v162_v43 = vadd.f32 %v161_v38, %v160_v32  ;;  %v243_v33 = vadd.f32 %v242_v27, %v240_v29 }
 0x125   :  { %v213_v46 = vrot.slane %v212_v41, 2  ;;  %323 = vpush %v162_v43 }
 0x126   :  { %325 = vpush %v176_v45 }
 0x127   :  { %v214_v49 = vadd.f32 %v213_v46, %v212_v41  ;;  %327 = vpush %v189_v44 }
 0x128   :  { %329 = vpush %v203_v47 }
 0x129   :  { %v215_v50 = vrot.slane %v214_v49, 1 }
 0x12b   :  { %v216_v51 = vadd.f32 %v215_v50, %v214_v49 }
 0x12d   :  { %331 = vpush %v216_v51 }
 0x14e   :  { %s322_s1 = spop %321 }
 0x14f   :  { %v151_v53 = vstv %s322_s1 }
 0x150   :  { %v152_v55 = vsel %vm138_vm3, %v151_v53, 0.0 }
 0x156   :  { %s324_s27 = spop %323 }
 0x157   :  { %s326_s28 = spop %325  ;;  %v164_v57 = vstv %s324_s27 }
 0x158   :  { %v178_v56 = vstv %s326_s28  ;;  %s328_s29 = spop %327  ;;  %v165_v62 = vsel %vm138_vm3, %v164_v57, 0.0 }
 0x159   :  { %v179_v58 = vsel %vm166_vm2, %v178_v56, %v152_v55  ;;  %s330_s30 = spop %329  ;;  %v191_v63 = vstv %s328_s29 }
 0x15a   :  { %v205_v59 = vstv %s330_s30  ;;  %v192_v5 = vsel %vm166_vm2, %v191_v63, %v165_v62 }
 0x15b   :  { %v206_v61 = vsel %vm193_vm1, %v205_v59, %v179_v58 }
 0x15c   :  { %v220_v4 = vmul.f32 0.00024414063, %v206_v61 }
 0x15e   :  { %s332_s7 = spop %331  ;;  %v222_v10 = vmul.f32 %v220_v4, %v220_v4 }
 0x15f   :  { %v218_v8 = vstv %s332_s7 }
 0x160   :  { %v219_v9 = vsel %vm193_vm1, %v218_v8, %v192_v5 }
 0x161   :  { %v221_v11 = vmul.f32 0.00024414063, %v219_v9 }
 0x163   :  { %v223_v12 = vsub.f32 %v221_v11, %v222_v10 }
 0x165   :  { %v224_v15 = vmax.f32 %v223_v12, 0.0 }
 0x167   :  { %v225_v16 = vadd.f32 1e-05, %v224_v15 }
 0x169   :  { %338 = vrsqrt.f32 %v225_v16  ;;  %vm232_vm6 = vweird.f32 %v225_v16 }
 0x16f   :  { %v339_v18 = vpop.eup %338 }
 0x170   :  { %v227_v19 = vmul.f32 %v339_v18, %v225_v16  ;;  %vm233_vm5 = vweird.f32 %v339_v18 }
 0x171   :  { %vm234_vm7 = vmor %vm232_vm6, %vm233_vm5 }
 0x172   :  { %v228_v20 = vmul.f32 %v339_v18, %v227_v19 }
 0x174   :  { %v229_v22 = vmul.f32 0.5, %v228_v20 }
 0x176   :  { %v230_v25 = vsub.f32 1.5, %v229_v22 }
 0x178   :  { %v231_v28 = vmul.f32 %v339_v18, %v230_v25 }
 0x17a   :  { %v235_v31 = vsel %vm234_vm7, %v339_v18, %v231_v28 }
 0x17b   :  { %v239_v32 = vmul.f32 %v238_v26, %v235_v31 }
 0x17d   :  { %248 = vperm.xlu2 %336, %v239_v32   ;;  %v244_v34 = vmul.f32 %v239_v32, %v220_v4 }
 0x17f   :  { %v245_v35 = vsub.f32 %v243_v33, %v244_v34 }
 0x181   :  { %269 = vperm.xlu0 %337, %v245_v35  }
 0x1d7   :  { %v249_v37 = vpop.permute.xlu2 %248 }
 0x1d8   :  { %v251_v38 = vmul.f32 %v249_v37, %v433_v0  ;;  %v252_v39 = vmul.f32 %v249_v37, %v435_v1  ;;  %v253_v41 = vmul.f32 %v249_v37, %v437_v2  ;;  %v254_v43 = vmul.f32 %v249_v37, %v439_v3 }
 0x1d9   :  { %v255_v45 = vmul.f32 %v249_v37, %v447_v7  ;;  %v256_v50 = vmul.f32 %v249_v37, %v457_v13  ;;  %v257_v52 = vmul.f32 %v249_v37, %v463_v17  ;;  %v258_v0 = vmul.f32 %v249_v37, %v472_v24 }
 0x1da   :  { %v259_v2 = vmul.f32 %v249_v37, %v479_v30  ;;  %v260_v7 = vmul.f32 %v249_v37, %v486_v36  ;;  %v261_v56 = vmul.f32 %v249_v37, %v493_v42  ;;  %v262_v17 = vmul.f32 %v249_v37, %v500_v48 }
 0x1db   :  { %v263_v24 = vmul.f32 %v249_v37, %v507_v54  ;;  %v264_v30 = vmul.f32 %v249_v37, %v514_v60  ;;  %v265_v36 = vmul.f32 %v249_v37, %v521_v6  ;;  %v266_v42 = vmul.f32 %v249_v37, %v528_v14 }
 0x1f3   :  { %v270_v44 = vpop.permute.xlu0 %269 }
 0x1f4   :  { %v272_v46 = vadd.f32 %v270_v44, %v251_v38  ;;  %v273_v47 = vadd.f32 %v270_v44, %v252_v39  ;;  %v274_v49 = vadd.f32 %v270_v44, %v253_v41  ;;  %v275_v51 = vadd.f32 %v270_v44, %v254_v43 }
 0x1f5   :  { %v276_v53 = vadd.f32 %v270_v44, %v255_v45  ;;  %v277_v1 = vadd.f32 %v270_v44, %v256_v50  ;;  %v278_v3 = vadd.f32 %v270_v44, %v257_v52  ;;  %v279_v55 = vadd.f32 %v270_v44, %v258_v0 }
 0x1f6   :  { %288 = vst [vmem:[#allocation5] sm:$0x3f] %v272_v46  ;;  %v280_v13 = vadd.f32 %v270_v44, %v259_v2  ;;  %v281_v57 = vadd.f32 %v270_v44, %v260_v7  ;;  %v282_v58 = vadd.f32 %v270_v44, %v261_v56  ;;  %v283_v59 = vadd.f32 %v270_v44, %v262_v17 }
 0x1f7   :  { %289 = vst [vmem:[#allocation5 + $0x8] sm:$0x3f] %v273_v47  ;;  %v284_v61 = vadd.f32 %v270_v44, %v263_v24  ;;  %v285_v62 = vadd.f32 %v270_v44, %v264_v30  ;;  %v286_v63 = vadd.f32 %v270_v44, %v265_v36  ;;  %v287_v48 = vadd.f32 %v270_v44, %v266_v42 }
 0x1f8   :  { %290 = vst [vmem:[#allocation5 + $0x10] sm:$0x3f] %v274_v49 }
 0x1f9   :  { %291 = vst [vmem:[#allocation5 + $0x18] sm:$0x3f] %v275_v51 }
 0x1fa   :  { %292 = vst [vmem:[#allocation5 + $0x20] sm:$0x3f] %v276_v53 }
 0x1fb   :  { %293 = vst [vmem:[#allocation5 + $0x28] sm:$0x3f] %v277_v1 }
 0x1fc   :  { %294 = vst [vmem:[#allocation5 + $0x30] sm:$0x3f] %v278_v3 }
 0x1fd   :  { %295 = vst [vmem:[#allocation5 + $0x38] sm:$0x3f] %v279_v55 }
 0x1fe   :  { %296 = vst [vmem:[#allocation5 + $0x40] sm:$0x3f] %v280_v13 }
 0x1ff   :  { %297 = vst [vmem:[#allocation5 + $0x48] sm:$0x3f] %v281_v57 }
 0x200   :  { %298 = vst [vmem:[#allocation5 + $0x50] sm:$0x3f] %v282_v58 }
 0x201   :  { %299 = vst [vmem:[#allocation5 + $0x58] sm:$0x3f] %v283_v59 }
 0x202   :  { %300 = vst [vmem:[#allocation5 + $0x60] sm:$0x3f] %v284_v61 }
 0x203   :  { %301 = vst [vmem:[#allocation5 + $0x68] sm:$0x3f] %v285_v62 }
 0x204   :  { %302 = vst [vmem:[#allocation5 + $0x70] sm:$0x3f] %v286_v63 }
 0x205   :  { %303 = vst [vmem:[#allocation5 + $0x78] sm:$0x3f] %v287_v48 }
 0x206   :  { %314 = dma.vmem_to_hbm [thread:$0]  %s310_s3, 2048, %s312_s16, [#allocation4]  }
 0x207   :  { %390 = dma.done.wait [#allocation4], 2048  }
 0x208   :  { %391 = vsyncadd [#allocation4], 4294965248 }
 0x209   :  { %319 = vsyncpa [#allocation3], 1 }
 0x20a   :  { %320 = vsyncpa [#allocation4], 1 }

</bundles_post_ra>
